<compile_context>
chip_gen: v6e
topology: v6e:2x2x1
jax: 0.10.0
libtpu: 0.0.40
codegen_flags: <defaults>
</compile_context>

<pallas_src>
import jax
import jax.numpy as jnp
from jax.experimental import pallas as pl
from jax.experimental.pallas import tpu as pltpu


# ----------------------------------------------------------------------------
# small helpers
# ----------------------------------------------------------------------------
def _round_up(x, m):
    return ((x + m - 1) // m) * m


def _row_tile(rows, pref=1024):
    """Largest row tile <= pref (multiple of 16) that divides `rows`."""
    if rows <= pref:
        return rows
    t = pref
    while rows % t:
        t -= 16
    return t


# ----------------------------------------------------------------------------
# Pallas kernels
# ----------------------------------------------------------------------------
def _conv_mm_stats_kernel(a_ref, w_ref, y_ref, psum_ref, pssq_ref):
    """bf16 im2col matmul tile (MXU, f32 accumulate) + per-tile BN partial stats.

    a_ref:    (TM, Kp)  bf16 im2col columns
    w_ref:    (Kp, Cp)  bf16 reshaped conv weight
    y_ref:    (TM, Cp)  bf16 conv output (pre-BN)
    psum_ref: (8,  Cp)  f32 per-tile channel sums (8 identical rows, lane-dense)
    pssq_ref: (8,  Cp)  f32 per-tile channel sums of squares
    """
    y = jnp.dot(a_ref[...], w_ref[...], preferred_element_type=jnp.float32)
    y_ref[...] = y.astype(y_ref.dtype)
    ps = jnp.sum(y, axis=0, keepdims=True)
    qs = jnp.sum(y * y, axis=0, keepdims=True)
    psum_ref[...] = jnp.broadcast_to(ps, psum_ref.shape)
    pssq_ref[...] = jnp.broadcast_to(qs, pssq_ref.shape)


def _bn_relu_kernel(y_ref, s_ref, b_ref, o_ref):
    """o = relu(y * scale + shift); math in f32, store bf16."""
    v = y_ref[...].astype(jnp.float32) * s_ref[...] + b_ref[...]
    o_ref[...] = jnp.maximum(v, 0.0).astype(o_ref.dtype)


def _bn_add_relu_kernel(y_ref, sc_ref, s1_ref, b1_ref, s2_ref, b2_ref, o_ref):
    """o = relu(bn(y) + bn(shortcut)); identity shortcut uses scale=1, shift=0."""
    v = (y_ref[...].astype(jnp.float32) * s1_ref[...] + b1_ref[...]
         + sc_ref[...].astype(jnp.float32) * s2_ref[...] + b2_ref[...])
    o_ref[...] = jnp.maximum(v, 0.0).astype(o_ref.dtype)


# ----------------------------------------------------------------------------
# pallas_call wrappers
# ----------------------------------------------------------------------------
def conv_matmul_with_stats(a, w, *, tm=512):
    """a: (M, Kc), w: (Kc, Cout) -> (y_padded (Mp, Cp) bf16, sum (Cout,), ssq (Cout,))."""
    M, Kc = a.shape
    Cout = w.shape[1]
    Kp = _round_up(Kc, 128)          # lane-aligned contraction dim
    Cp = _round_up(Cout, 128)        # lane-dense output channels
    TM = min(tm, _round_up(M, 16))   # row tile (multiple of 16 for bf16 tiles)
    Mp = _round_up(M, TM)
    G = Mp // TM

    a_p = jnp.pad(a.astype(jnp.bfloat16), ((0, Mp - M), (0, Kp - Kc)))
    w_p = jnp.pad(w.astype(jnp.bfloat16), ((0, Kp - Kc), (0, Cp - Cout)))

    # 2x A + 2x y (double buffered) + weights + stat tiles, with headroom.
    tile_bytes = (2 * TM * Kp * 2 + 2 * TM * Cp * 2 + 2 * Kp * Cp * 2
                  + 4 * 8 * Cp * 4)
    vmem_limit = int(min(max(2 * tile_bytes, 8 << 20), 64 << 20))

    y, ps, pq = pl.pallas_call(
        _conv_mm_stats_kernel,
        out_shape=(
            jax.ShapeDtypeStruct((Mp, Cp), jnp.bfloat16),
            jax.ShapeDtypeStruct((G * 8, Cp), jnp.float32),
            jax.ShapeDtypeStruct((G * 8, Cp), jnp.float32),
        ),
        grid=(G,),
        in_specs=[
            pl.BlockSpec((TM, Kp), lambda i: (i, 0)),
            pl.BlockSpec((Kp, Cp), lambda i: (0, 0)),
        ],
        out_specs=(
            pl.BlockSpec((TM, Cp), lambda i: (i, 0)),
            pl.BlockSpec((8, Cp), lambda i: (i, 0)),
            pl.BlockSpec((8, Cp), lambda i: (i, 0)),
        ),
        compiler_params=pltpu.CompilerParams(
            dimension_semantics=("parallel",),   # no grid-carried accumulator
            vmem_limit_bytes=vmem_limit,
        ),
    )(a_p, w_p)

    # Reduce per-tile partials in JAX (rows within each group of 8 are identical).
    s = ps.reshape(G, 8, Cp)[:, 0, :].sum(axis=0)[:Cout]
    q = pq.reshape(G, 8, Cp)[:, 0, :].sum(axis=0)[:Cout]
    return y, s, q


def bn_relu(y, scale, shift, out_dtype=jnp.bfloat16):
    """y: (Mp, Cp); scale/shift: (Cp,) -> relu(y*scale+shift), large row tiles."""
    Mp, Cp = y.shape
    TR = _row_tile(Mp)
    return pl.pallas_call(
        _bn_relu_kernel,
        out_shape=jax.ShapeDtypeStruct((Mp, Cp), out_dtype),
        grid=(Mp // TR,),
        in_specs=[
            pl.BlockSpec((TR, Cp), lambda i: (i, 0)),
            pl.BlockSpec((1, Cp), lambda i: (0, 0)),
            pl.BlockSpec((1, Cp), lambda i: (0, 0)),
        ],
        out_specs=pl.BlockSpec((TR, Cp), lambda i: (i, 0)),
        compiler_params=pltpu.CompilerParams(dimension_semantics=("parallel",)),
    )(y, scale.reshape(1, Cp), shift.reshape(1, Cp))


def bn_add_relu(y, sc, s1, b1, s2, b2):
    """relu(bn(y) + bn(shortcut)) on (Mp, Cp) row tiles; output f32."""
    Mp, Cp = y.shape
    TR = _row_tile(Mp)
    return pl.pallas_call(
        _bn_add_relu_kernel,
        out_shape=jax.ShapeDtypeStruct((Mp, Cp), jnp.float32),
        grid=(Mp // TR,),
        in_specs=[
            pl.BlockSpec((TR, Cp), lambda i: (i, 0)),
            pl.BlockSpec((TR, Cp), lambda i: (i, 0)),
            pl.BlockSpec((1, Cp), lambda i: (0, 0)),
            pl.BlockSpec((1, Cp), lambda i: (0, 0)),
            pl.BlockSpec((1, Cp), lambda i: (0, 0)),
            pl.BlockSpec((1, Cp), lambda i: (0, 0)),
        ],
        out_specs=pl.BlockSpec((TR, Cp), lambda i: (i, 0)),
        compiler_params=pltpu.CompilerParams(dimension_semantics=("parallel",)),
    )(y, sc, s1.reshape(1, Cp), b1.reshape(1, Cp),
      s2.reshape(1, Cp), b2.reshape(1, Cp))


# ----------------------------------------------------------------------------
# JAX glue: im2col, weight reshape, BN scale/shift from batch stats
# ----------------------------------------------------------------------------
def im2col(x_nhwc, K, stride):
    """x: (N,H,W,Cin) -> (N, OH*OW, K*K*Cin), 'same'-style pad = (K-1)//2."""
    pad = (K - 1) // 2
    N, H, W, C = x_nhwc.shape
    xp = jnp.pad(x_nhwc, ((0, 0), (pad, pad), (pad, pad), (0, 0)))
    OH = (H + 2 * pad - K) // stride + 1
    OW = (W + 2 * pad - K) // stride + 1
    cols = []
    for kh in range(K):
        for kw in range(K):
            cols.append(xp[:,
                           kh:kh + (OH - 1) * stride + 1:stride,
                           kw:kw + (OW - 1) * stride + 1:stride, :])
    a = jnp.concatenate(cols, axis=-1)                # (N, OH, OW, K*K*Cin)
    return a.reshape(N, OH * OW, K * K * C), OH, OW


def torch_w_to_mm(w):
    """(Cout, Cin, K, K) torch conv weight -> (K*K*Cin, Cout) matmul weight."""
    Cout, Cin, K, _ = w.shape
    return jnp.transpose(w, (2, 3, 1, 0)).reshape(K * K * Cin, Cout)


def bn_scale_shift(s, ssq, count, gamma, beta, eps=1e-5):
    """Train-mode BatchNorm (biased variance) folded into per-channel affine."""
    mean = s / count
    var = ssq / count - mean * mean
    inv = gamma / jnp.sqrt(var + eps)
    return inv, beta - mean * inv


def _pad_vec(v, cp):
    return jnp.pad(v.astype(jnp.float32), (0, cp - v.shape[0]))


# ----------------------------------------------------------------------------
# ResidualBLK forward
# ----------------------------------------------------------------------------
def init_params(key, in_chn, out_chn):
    ks = jax.random.split(key, 9)
    return {
        "w1": 0.1 * jax.random.normal(ks[0], (out_chn, in_chn, 3, 3), jnp.float32),
        "w2": 0.1 * jax.random.normal(ks[1], (out_chn, out_chn, 3, 3), jnp.float32),
        "wsc": 0.1 * jax.random.normal(ks[2], (out_chn, in_chn, 1, 1), jnp.float32),
        "g1": 1.0 + 0.1 * jax.random.normal(ks[3], (out_chn,), jnp.float32),
        "b1": 0.1 * jax.random.normal(ks[4], (out_chn,), jnp.float32),
        "g2": 1.0 + 0.1 * jax.random.normal(ks[5], (out_chn,), jnp.float32),
        "b2": 0.1 * jax.random.normal(ks[6], (out_chn,), jnp.float32),
        "gsc": 1.0 + 0.1 * jax.random.normal(ks[7], (out_chn,), jnp.float32),
        "bsc": 0.1 * jax.random.normal(ks[8], (out_chn,), jnp.float32),
    }


def residual_blk_forward(params, x_nchw, stride):
    x = jnp.transpose(x_nchw, (0, 2, 3, 1)).astype(jnp.float32)   # NCHW -> NHWC
    N, H, W, Cin = x.shape
    Cout = params["w1"].shape[0]
    Cp = _round_up(Cout, 128)

    # --- conv1 (3x3, stride) + bn1 + relu ---
    a1, OH1, OW1 = im2col(x, 3, stride)
    M1 = N * OH1 * OW1
    y1, s1, q1 = conv_matmul_with_stats(a1.reshape(M1, -1), torch_w_to_mm(params["w1"]))
    sc1, sh1 = bn_scale_shift(s1, q1, M1, params["g1"], params["b1"])
    h1 = bn_relu(y1, _pad_vec(sc1, Cp), _pad_vec(sh1, Cp))         # (M1p, Cp) bf16
    h1 = h1[:M1, :Cout].reshape(N, OH1, OW1, Cout)

    # --- conv2 (3x3, stride 1) + bn2 ---
    a2, OH2, OW2 = im2col(h1, 3, 1)
    M2 = N * OH2 * OW2
    y2, s2, q2 = conv_matmul_with_stats(a2.reshape(M2, -1), torch_w_to_mm(params["w2"]))
    sc2, sh2 = bn_scale_shift(s2, q2, M2, params["g2"], params["b2"])
    Mp2, Cp2 = y2.shape

    # --- shortcut ---
    if stride != 1:
        asc, _, _ = im2col(x, 1, stride)
        ysc, ss, qs = conv_matmul_with_stats(asc.reshape(M2, -1),
                                             torch_w_to_mm(params["wsc"]))
        scs, shs = bn_scale_shift(ss, qs, M2, params["gsc"], params["bsc"])
        sc_arr = ysc                                               # (Mp2, Cp2) bf16
    else:
        # identity shortcut (as in the PyTorch module; requires Cin == Cout)
        sc_arr = jnp.pad(x.reshape(M2, Cin).astype(jnp.bfloat16),
                         ((0, Mp2 - M2), (0, Cp2 - Cin)))
        scs = jnp.ones((Cout,), jnp.float32)
        shs = jnp.zeros((Cout,), jnp.float32)

    out = bn_add_relu(y2, sc_arr, _pad_vec(sc2, Cp2), _pad_vec(sh2, Cp2),
                      _pad_vec(scs, Cp2), _pad_vec(shs, Cp2))      # (Mp2, Cp2) f32
    out = out[:M2, :Cout].reshape(N, OH2, OW2, Cout)
    return jnp.transpose(out, (0, 3, 1, 2))                        # NHWC -> NCHW


# ----------------------------------------------------------------------------
# Pure-JAX reference (same train-mode BN semantics) for correctness check
# ----------------------------------------------------------------------------
def _ref_forward(params, x_nchw, stride):
    x = x_nchw.astype(jnp.float32)

    def conv(v, w, s, pad):
        return jax.lax.conv_general_dilated(
            v, w, window_strides=(s, s), padding=[(pad, pad), (pad, pad)],
            dimension_numbers=("NCHW", "OIHW", "NCHW"),
            precision=jax.lax.Precision.HIGHEST)

    def bn(v, g, b, eps=1e-5):
        mean = jnp.mean(v, axis=(0, 2, 3), keepdims=True)
        var = jnp.mean((v - mean) ** 2, axis=(0, 2, 3), keepdims=True)
        return ((v - mean) / jnp.sqrt(var + eps)) * g.reshape(1, -1, 1, 1) \
            + b.reshape(1, -1, 1, 1)

    h = jnp.maximum(bn(conv(x, params["w1"], stride, 1), params["g1"], params["b1"]), 0.0)
    y = bn(conv(h, params["w2"], 1, 1), params["g2"], params["b2"])
    if stride != 1:
        s = bn(conv(x, params["wsc"], stride, 0), params["gsc"], params["bsc"])
    else:
        s = x
    return jnp.maximum(y + s, 0.0)


# ----------------------------------------------------------------------------
if __name__ == "__main__":
    key = jax.random.PRNGKey(0)
    k_x1, k_p1, k_x2, k_p2 = jax.random.split(key, 4)

    fwd = jax.jit(residual_blk_forward, static_argnums=2)

    # MXU path runs in bf16 (f32 accumulation), so tolerances are relaxed vs.
    # the f32/HIGHEST-precision reference.
    ATOL = RTOL = 5e-2

    # Case 1: stride=2, projection shortcut (in_chn=4 -> out_chn=8).
    x1 = jax.random.normal(k_x1, (2, 4, 16, 16), jnp.float32)      # NCHW
    params1 = init_params(k_p1, in_chn=4, out_chn=8)
    out1 = jax.block_until_ready(fwd(params1, x1, 2))
    assert out1.shape == (2, 8, 8, 8)
    ref1 = _ref_forward(params1, x1, stride=2)
    assert jnp.allclose(out1, ref1, atol=ATOL, rtol=RTOL)

    # Case 2: stride=1, identity shortcut (in_chn == out_chn = 4).
    x2 = jax.random.normal(k_x2, (2, 4, 16, 16), jnp.float32)
    params2 = init_params(k_p2, in_chn=4, out_chn=4)
    out2 = jax.block_until_ready(fwd(params2, x2, 1))
    assert out2.shape == (2, 4, 16, 16)
    ref2 = _ref_forward(params2, x2, stride=1)
    assert jnp.allclose(out2, ref2, atol=ATOL, rtol=RTOL)

    print("KERNEL_OK")
</pallas_src>

<mosaic_0001>
module attributes {stable_mosaic.version = 11 : i64} {
  func.func @_conv_mm_stats_kernel(%arg0: i32, %arg1: memref<128x128xbf16, #tpu.memory_space<vmem>>, %arg2: memref<128x128xbf16, #tpu.memory_space<vmem>>, %arg3: memref<128x128xbf16, #tpu.memory_space<vmem>>, %arg4: memref<8x128xf32, #tpu.memory_space<vmem>>, %arg5: memref<8x128xf32, #tpu.memory_space<vmem>>) attributes {dimension_semantics = [#tpu.dimension_semantics<parallel>], iteration_bounds = array<i64: 1>, scalar_prefetch = 0 : i64, scratch_operands = 0 : i64, tpu.core_type = #tpu.core_type<tc>, window_params = [{transform_indices = @transform_0, window_bounds = array<i64: 128, 128>}, {pipeline_mode = #tpu.pipeline_mode<synchronous>, transform_indices = @transform_1, window_bounds = array<i64: 128, 128>}, {transform_indices = @transform_2, window_bounds = array<i64: 128, 128>}, {transform_indices = @transform_3, window_bounds = array<i64: 8, 128>}, {transform_indices = @transform_4, window_bounds = array<i64: 8, 128>}]} {
    %c0 = arith.constant 0 : index
    %c0_0 = arith.constant 0 : index
    %0 = vector.load %arg1[%c0, %c0_0] : memref<128x128xbf16, #tpu.memory_space<vmem>>, vector<128x128xbf16>
    %c0_1 = arith.constant 0 : index
    %c0_2 = arith.constant 0 : index
    %1 = vector.load %arg2[%c0_1, %c0_2] : memref<128x128xbf16, #tpu.memory_space<vmem>>, vector<128x128xbf16>
    %cst = arith.constant dense<0.000000e+00> : vector<128x128xf32>
    %2 = tpu.matmul %0, %1, %cst {dimension_numbers = #tpu.dot_dimension_numbers<[1], [0], [0], [1], [0, 0, 1, 1], [], []>} : vector<128x128xbf16>, vector<128x128xbf16>, vector<128x128xf32> -> vector<128x128xf32>
    %3 = arith.truncf %2 : vector<128x128xf32> to vector<128x128xbf16>
    %c0_3 = arith.constant 0 : index
    %c0_4 = arith.constant 0 : index
    %4 = vector.load %arg3[%c0_3, %c0_4] : memref<128x128xbf16, #tpu.memory_space<vmem>>, vector<128x128xbf16>
    tpu.vector_store %arg3[%c0_3, %c0_4], %3 {strides = array<i32>} : memref<128x128xbf16, #tpu.memory_space<vmem>>, vector<128x128xbf16>,
    %cst_5 = arith.constant dense<0.000000e+00> : vector<128xf32>
    %5 = vector.multi_reduction <add>, %2, %cst_5 [0] : vector<128x128xf32> to vector<128xf32>
    %6 = vector.shape_cast %5 : vector<128xf32> to vector<1x128xf32>
    %7 = arith.mulf %2, %2 : vector<128x128xf32>
    %cst_6 = arith.constant dense<0.000000e+00> : vector<128xf32>
    %8 = vector.multi_reduction <add>, %7, %cst_6 [0] : vector<128x128xf32> to vector<128xf32>
    %9 = vector.shape_cast %8 : vector<128xf32> to vector<1x128xf32>
    %10 = vector.shape_cast %6 : vector<1x128xf32> to vector<1x128xf32>
    %11 = vector.broadcast %10 : vector<1x128xf32> to vector<8x128xf32>
    %c0_7 = arith.constant 0 : index
    %c0_8 = arith.constant 0 : index
    %12 = vector.load %arg4[%c0_7, %c0_8] : memref<8x128xf32, #tpu.memory_space<vmem>>, vector<8x128xf32>
    tpu.vector_store %arg4[%c0_7, %c0_8], %11 {strides = array<i32>} : memref<8x128xf32, #tpu.memory_space<vmem>>, vector<8x128xf32>,
    %13 = vector.shape_cast %9 : vector<1x128xf32> to vector<1x128xf32>
    %14 = vector.broadcast %13 : vector<1x128xf32> to vector<8x128xf32>
    %c0_9 = arith.constant 0 : index
    %c0_10 = arith.constant 0 : index
    %15 = vector.load %arg5[%c0_9, %c0_10] : memref<8x128xf32, #tpu.memory_space<vmem>>, vector<8x128xf32>
    tpu.vector_store %arg5[%c0_9, %c0_10], %14 {strides = array<i32>} : memref<8x128xf32, #tpu.memory_space<vmem>>, vector<8x128xf32>,
    return
  }
  func.func @transform_0(%arg0: i32) -> (i32, i32) {
    %c0_i32 = arith.constant 0 : i32
    %c0_i32_0 = arith.constant 0 : i32
    return %arg0, %c0_i32 : i32, i32
  }
  func.func @transform_1(%arg0: i32) -> (i32, i32) {
    %c0_i32 = arith.constant 0 : i32
    %c0_i32_0 = arith.constant 0 : i32
    %c0_i32_1 = arith.constant 0 : i32
    return %c0_i32, %c0_i32_0 : i32, i32
  }
  func.func @transform_2(%arg0: i32) -> (i32, i32) {
    %c0_i32 = arith.constant 0 : i32
    %c0_i32_0 = arith.constant 0 : i32
    return %arg0, %c0_i32 : i32, i32
  }
  func.func @transform_3(%arg0: i32) -> (i32, i32) {
    %c0_i32 = arith.constant 0 : i32
    %c0_i32_0 = arith.constant 0 : i32
    return %arg0, %c0_i32 : i32, i32
  }
  func.func @transform_4(%arg0: i32) -> (i32, i32) {
    %c0_i32 = arith.constant 0 : i32
    %c0_i32_0 = arith.constant 0 : i32
    return %arg0, %c0_i32 : i32, i32
  }
}

module attributes {stable_mosaic.version = 11 : i64} {
  func.func @_bn_relu_kernel(%arg0: i32, %arg1: memref<128x128xbf16, #tpu.memory_space<vmem>>, %arg2: memref<1x128xf32, #tpu.memory_space<vmem>>, %arg3: memref<1x128xf32, #tpu.memory_space<vmem>>, %arg4: memref<128x128xbf16, #tpu.memory_space<vmem>>) attributes {dimension_semantics = [#tpu.dimension_semantics<parallel>], iteration_bounds = array<i64: 1>, scalar_prefetch = 0 : i64, scratch_operands = 0 : i64, tpu.core_type = #tpu.core_type<tc>, window_params = [{transform_indices = @transform_0, window_bounds = array<i64: 128, 128>}, {pipeline_mode = #tpu.pipeline_mode<synchronous>, transform_indices = @transform_1, window_bounds = array<i64: 1, 128>}, {pipeline_mode = #tpu.pipeline_mode<synchronous>, transform_indices = @transform_2, window_bounds = array<i64: 1, 128>}, {transform_indices = @transform_3, window_bounds = array<i64: 128, 128>}]} {
    %c0 = arith.constant 0 : index
    %c0_0 = arith.constant 0 : index
    %0 = vector.load %arg1[%c0, %c0_0] : memref<128x128xbf16, #tpu.memory_space<vmem>>, vector<128x128xbf16>
    %1 = arith.extf %0 : vector<128x128xbf16> to vector<128x128xf32>
    %c0_1 = arith.constant 0 : index
    %c0_2 = arith.constant 0 : index
    %2 = vector.load %arg2[%c0_1, %c0_2] : memref<1x128xf32, #tpu.memory_space<vmem>>, vector<1x128xf32>
    %3 = vector.broadcast %2 : vector<1x128xf32> to vector<128x128xf32>
    %4 = arith.mulf %1, %3 : vector<128x128xf32>
    %c0_3 = arith.constant 0 : index
    %c0_4 = arith.constant 0 : index
    %5 = vector.load %arg3[%c0_3, %c0_4] : memref<1x128xf32, #tpu.memory_space<vmem>>, vector<1x128xf32>
    %6 = vector.broadcast %5 : vector<1x128xf32> to vector<128x128xf32>
    %7 = arith.addf %4, %6 : vector<128x128xf32>
    %cst = arith.constant 0.000000e+00 : f32
    %8 = vector.broadcast %cst : f32 to vector<128x128xf32>
    %9 = arith.maximumf %7, %8 : vector<128x128xf32>
    %10 = arith.truncf %9 : vector<128x128xf32> to vector<128x128xbf16>
    %c0_5 = arith.constant 0 : index
    %c0_6 = arith.constant 0 : index
    %11 = vector.load %arg4[%c0_5, %c0_6] : memref<128x128xbf16, #tpu.memory_space<vmem>>, vector<128x128xbf16>
    tpu.vector_store %arg4[%c0_5, %c0_6], %10 {strides = array<i32>} : memref<128x128xbf16, #tpu.memory_space<vmem>>, vector<128x128xbf16>,
    return
  }
  func.func @transform_0(%arg0: i32) -> (i32, i32) {
    %c0_i32 = arith.constant 0 : i32
    %c0_i32_0 = arith.constant 0 : i32
    return %arg0, %c0_i32 : i32, i32
  }
  func.func @transform_1(%arg0: i32) -> (i32, i32) {
    %c0_i32 = arith.constant 0 : i32
    %c0_i32_0 = arith.constant 0 : i32
    %c0_i32_1 = arith.constant 0 : i32
    return %c0_i32, %c0_i32_0 : i32, i32
  }
  func.func @transform_2(%arg0: i32) -> (i32, i32) {
    %c0_i32 = arith.constant 0 : i32
    %c0_i32_0 = arith.constant 0 : i32
    %c0_i32_1 = arith.constant 0 : i32
    return %c0_i32, %c0_i32_0 : i32, i32
  }
  func.func @transform_3(%arg0: i32) -> (i32, i32) {
    %c0_i32 = arith.constant 0 : i32
    %c0_i32_0 = arith.constant 0 : i32
    return %arg0, %c0_i32 : i32, i32
  }
}

module attributes {stable_mosaic.version = 11 : i64} {
  func.func @_bn_add_relu_kernel(%arg0: i32, %arg1: memref<128x128xbf16, #tpu.memory_space<vmem>>, %arg2: memref<128x128xbf16, #tpu.memory_space<vmem>>, %arg3: memref<1x128xf32, #tpu.memory_space<vmem>>, %arg4: memref<1x128xf32, #tpu.memory_space<vmem>>, %arg5: memref<1x128xf32, #tpu.memory_space<vmem>>, %arg6: memref<1x128xf32, #tpu.memory_space<vmem>>, %arg7: memref<128x128xf32, #tpu.memory_space<vmem>>) attributes {dimension_semantics = [#tpu.dimension_semantics<parallel>], iteration_bounds = array<i64: 1>, scalar_prefetch = 0 : i64, scratch_operands = 0 : i64, tpu.core_type = #tpu.core_type<tc>, window_params = [{transform_indices = @transform_0, window_bounds = array<i64: 128, 128>}, {transform_indices = @transform_1, window_bounds = array<i64: 128, 128>}, {pipeline_mode = #tpu.pipeline_mode<synchronous>, transform_indices = @transform_2, window_bounds = array<i64: 1, 128>}, {pipeline_mode = #tpu.pipeline_mode<synchronous>, transform_indices = @transform_3, window_bounds = array<i64: 1, 128>}, {pipeline_mode = #tpu.pipeline_mode<synchronous>, transform_indices = @transform_4, window_bounds = array<i64: 1, 128>}, {pipeline_mode = #tpu.pipeline_mode<synchronous>, transform_indices = @transform_5, window_bounds = array<i64: 1, 128>}, {transform_indices = @transform_6, window_bounds = array<i64: 128, 128>}]} {
    %c0 = arith.constant 0 : index
    %c0_0 = arith.constant 0 : index
    %0 = vector.load %arg1[%c0, %c0_0] : memref<128x128xbf16, #tpu.memory_space<vmem>>, vector<128x128xbf16>
    %1 = arith.extf %0 : vector<128x128xbf16> to vector<128x128xf32>
    %c0_1 = arith.constant 0 : index
    %c0_2 = arith.constant 0 : index
    %2 = vector.load %arg3[%c0_1, %c0_2] : memref<1x128xf32, #tpu.memory_space<vmem>>, vector<1x128xf32>
    %3 = vector.broadcast %2 : vector<1x128xf32> to vector<128x128xf32>
    %4 = arith.mulf %1, %3 : vector<128x128xf32>
    %c0_3 = arith.constant 0 : index
    %c0_4 = arith.constant 0 : index
    %5 = vector.load %arg4[%c0_3, %c0_4] : memref<1x128xf32, #tpu.memory_space<vmem>>, vector<1x128xf32>
    %6 = vector.broadcast %5 : vector<1x128xf32> to vector<128x128xf32>
    %7 = arith.addf %4, %6 : vector<128x128xf32>
    %c0_5 = arith.constant 0 : index
    %c0_6 = arith.constant 0 : index
    %8 = vector.load %arg2[%c0_5, %c0_6] : memref<128x128xbf16, #tpu.memory_space<vmem>>, vector<128x128xbf16>
    %9 = arith.extf %8 : vector<128x128xbf16> to vector<128x128xf32>
    %c0_7 = arith.constant 0 : index
    %c0_8 = arith.constant 0 : index
    %10 = vector.load %arg5[%c0_7, %c0_8] : memref<1x128xf32, #tpu.memory_space<vmem>>, vector<1x128xf32>
    %11 = vector.broadcast %10 : vector<1x128xf32> to vector<128x128xf32>
    %12 = arith.mulf %9, %11 : vector<128x128xf32>
    %13 = arith.addf %7, %12 : vector<128x128xf32>
    %c0_9 = arith.constant 0 : index
    %c0_10 = arith.constant 0 : index
    %14 = vector.load %arg6[%c0_9, %c0_10] : memref<1x128xf32, #tpu.memory_space<vmem>>, vector<1x128xf32>
    %15 = vector.broadcast %14 : vector<1x128xf32> to vector<128x128xf32>
    %16 = arith.addf %13, %15 : vector<128x128xf32>
    %cst = arith.constant 0.000000e+00 : f32
    %17 = vector.broadcast %cst : f32 to vector<128x128xf32>
    %18 = arith.maximumf %16, %17 : vector<128x128xf32>
    %c0_11 = arith.constant 0 : index
    %c0_12 = arith.constant 0 : index
    %19 = vector.load %arg7[%c0_11, %c0_12] : memref<128x128xf32, #tpu.memory_space<vmem>>, vector<128x128xf32>
    tpu.vector_store %arg7[%c0_11, %c0_12], %18 {strides = array<i32>} : memref<128x128xf32, #tpu.memory_space<vmem>>, vector<128x128xf32>,
    return
  }
  func.func @transform_0(%arg0: i32) -> (i32, i32) {
    %c0_i32 = arith.constant 0 : i32
    %c0_i32_0 = arith.constant 0 : i32
    return %arg0, %c0_i32 : i32, i32
  }
  func.func @transform_1(%arg0: i32) -> (i32, i32) {
    %c0_i32 = arith.constant 0 : i32
    %c0_i32_0 = arith.constant 0 : i32
    return %arg0, %c0_i32 : i32, i32
  }
  func.func @transform_2(%arg0: i32) -> (i32, i32) {
    %c0_i32 = arith.constant 0 : i32
    %c0_i32_0 = arith.constant 0 : i32
    %c0_i32_1 = arith.constant 0 : i32
    return %c0_i32, %c0_i32_0 : i32, i32
  }
  func.func @transform_3(%arg0: i32) -> (i32, i32) {
    %c0_i32 = arith.constant 0 : i32
    %c0_i32_0 = arith.constant 0 : i32
    %c0_i32_1 = arith.constant 0 : i32
    return %c0_i32, %c0_i32_0 : i32, i32
  }
  func.func @transform_4(%arg0: i32) -> (i32, i32) {
    %c0_i32 = arith.constant 0 : i32
    %c0_i32_0 = arith.constant 0 : i32
    %c0_i32_1 = arith.constant 0 : i32
    return %c0_i32, %c0_i32_0 : i32, i32
  }
  func.func @transform_5(%arg0: i32) -> (i32, i32) {
    %c0_i32 = arith.constant 0 : i32
    %c0_i32_0 = arith.constant 0 : i32
    %c0_i32_1 = arith.constant 0 : i32
    return %c0_i32, %c0_i32_0 : i32, i32
  }
  func.func @transform_6(%arg0: i32) -> (i32, i32) {
    %c0_i32 = arith.constant 0 : i32
    %c0_i32_0 = arith.constant 0 : i32
    return %arg0, %c0_i32 : i32, i32
  }
}

</mosaic_0001>

<bundles_post_ra>
// kernel: residual_blk_forward.8
= control target key start
LH: loop header
LB: loop body
LE: loop exit
PB: predicated region body
PF: predicated region fallthrough
CT: control target
= control target key end

     0   :  { %s670_s1 = inlined_call_operand.vmem [shape: bf16[128,128], index: 1, kind: input, shape index: {}]   ;;  %s671_s0 = inlined_call_operand.vmem [shape: bf16[128,128], index: 0, kind: input, shape index: {}]   ;;  %s672_s2 = inlined_call_operand.vmem [shape: bf16[128,128], index: 2, kind: output, shape index: {0}]   ;;  %s673_s3 = inlined_call_operand.vmem [shape: f32[8,128], index: 3, kind: output, shape index: {1}]   ;;  %s674_s4 = inlined_call_operand.vmem [shape: f32[8,128], index: 4, kind: output, shape index: {2}]  }
   0x1   :  { %v551_v0 = vld [vmem:[%s670_s1 + $0x38] sm:$0xff]   ;;  %v552_v1 = vld [vmem:[%s670_s1 + $0x30] sm:$0xff]   ;;  %v553_v2 = vld [vmem:[%s670_s1 + $0x28] sm:$0xff]  }
   0x2   :  { %503 = vmatprep.subr.bf16.mxu0 %v551_v0  ;;  %535 = vmatprep.subr.bf16.mxu1 %v551_v0  ;;  %v554_v3 = vld [vmem:[%s670_s1 + $0x20] sm:$0xff]   ;;  %v555_v5 = vld [vmem:[%s670_s1 + $0x18] sm:$0xff]   ;;  %v556_v7 = vld [vmem:[%s670_s1 + $0x10] sm:$0xff]  }
   0x3   :  { %504 = vmatpush3.bf16.msra.mxu0 %v551_v0  ;;  %543 = vmatpush3.bf16.msra.mxu1 %v551_v0  ;;  %v559_v4 = vld [vmem:[%s671_s0] sm:$0xff]   ;;  %v557_v8 = vld [vmem:[%s670_s1 + $0x8] sm:$0xff]   ;;  %v561_v12 = vld [vmem:[%s671_s0 + $0x10] sm:$0xff]  }
   0x4   :  { %505 = vmatprep.subr.bf16.mxu0 %v552_v1  ;;  %536 = vmatprep.subr.bf16.mxu1 %v552_v1  ;;  %v563_v6 = vld [vmem:[%s671_s0 + $0x20] sm:$0xff]   ;;  %v560_v10 = vld [vmem:[%s671_s0 + $0x8] sm:$0xff]   ;;  %v565_v13 = vld [vmem:[%s671_s0 + $0x30] sm:$0xff]  }
   0x5   :  { %519 = vmatprep.mubr.bf16.mxu0 %v559_v4  ;;  %527 = vmatprep.mubr.bf16.mxu1 %v563_v6  ;;  %v558_v9 = vld [vmem:[%s670_s1] sm:$0xff]   ;;  %v564_v11 = vld [vmem:[%s671_s0 + $0x28] sm:$0xff]   ;;  %v562_v14 = vld [vmem:[%s671_s0 + $0x18] sm:$0xff]  }
   0x6   :  { %v566_v15 = vld [vmem:[%s671_s0 + $0x38] sm:$0xff]  }
   0x7   :  { %506 = vmatpush3.bf16.msra.mxu0 %v552_v1  ;;  %544 = vmatpush3.bf16.msra.mxu1 %v552_v1 }
   0x8   :  { %507 = vmatprep.subr.bf16.mxu0 %v553_v2  ;;  %537 = vmatprep.subr.bf16.mxu1 %v553_v2 }
   0xb   :  { %508 = vmatpush3.bf16.msra.mxu0 %v553_v2  ;;  %545 = vmatpush3.bf16.msra.mxu1 %v553_v2 }
   0xc   :  { %509 = vmatprep.subr.bf16.mxu0 %v554_v3  ;;  %538 = vmatprep.subr.bf16.mxu1 %v554_v3 }
   0xf   :  { %510 = vmatpush3.bf16.msra.mxu0 %v554_v3  ;;  %546 = vmatpush3.bf16.msra.mxu1 %v554_v3 }
  0x10   :  { %511 = vmatprep.subr.bf16.mxu0 %v555_v5  ;;  %539 = vmatprep.subr.bf16.mxu1 %v555_v5 }
  0x13   :  { %512 = vmatpush3.bf16.msra.mxu0 %v555_v5  ;;  %547 = vmatpush3.bf16.msra.mxu1 %v555_v5 }
  0x14   :  { %513 = vmatprep.subr.bf16.mxu0 %v556_v7  ;;  %540 = vmatprep.subr.bf16.mxu1 %v556_v7 }
  0x17   :  { %514 = vmatpush3.bf16.msra.mxu0 %v556_v7  ;;  %548 = vmatpush3.bf16.msra.mxu1 %v556_v7 }
  0x18   :  { %515 = vmatprep.subr.bf16.mxu0 %v557_v8  ;;  %541 = vmatprep.subr.bf16.mxu1 %v557_v8 }
  0x1b   :  { %516 = vmatpush3.bf16.msra.mxu0 %v557_v8  ;;  %549 = vmatpush3.bf16.msra.mxu1 %v557_v8 }
  0x1c   :  { %517 = vmatprep.subr.bf16.mxu0 %v558_v9  ;;  %542 = vmatprep.subr.bf16.mxu1 %v558_v9 }
  0x1f   :  { %518 = vmatpush3.bf16.msra.mxu0 %v558_v9  ;;  %550 = vmatpush3.bf16.msra.mxu1 %v558_v9 }
  0x22   :  { %520 = vmatmul.mubr.bf16.vlgmr.msra.gmra.mxu0 %v560_v10  ;;  %528 = vmatmul.mubr.bf16.vlgmr.msra.gmra.mxu1 %v564_v11 }
  0x23   :  { %523 = vmatprep.mubr.bf16.mxu0 %v561_v12  ;;  %531 = vmatprep.mubr.bf16.mxu1 %v565_v13 }
  0x2a   :  { %524 = vmatmul.mubr.bf16.gmra.mxu0 %v562_v14  ;;  %532 = vmatmul.mubr.bf16.gmra.mxu1 %v566_v15 }
  0xe2   :  { %v521_v16 = vpop.f32.mrf.mxu0  ;;  %v529_v17 = vpop.f32.mrf.mxu1 }
  0xe3   :  { %v343_v33 = vmul.f32 %v521_v16, %v521_v16  ;;  %v351_v3 = vmul.f32 %v529_v17, %v529_v17 }
  0xe4   :  { %v177_v18 = vpop.f32.mrf.mxu0  ;;  %v209_v19 = vpop.f32.mrf.mxu1 }
  0xe5   :  { %v341_v24 = vmul.f32 %v177_v18, %v177_v18  ;;  %v349_v61 = vmul.f32 %v209_v19, %v209_v19 }
  0xe6   :  { %v522_v20 = vpop.f32.mrf.mxu0  ;;  %v530_v21 = vpop.f32.mrf.mxu1 }
  0xe7   :  { %v448_v22 = vpack.c.bf16 %v522_v20, %v521_v16  ;;  %v468_v23 = vpack.c.bf16 %v530_v21, %v529_v17  ;;  %v344_v38 = vmul.f32 %v522_v20, %v522_v20  ;;  %v352_v6 = vmul.f32 %v530_v21, %v530_v21 }
  0xe8   :  { %v180_v25 = vpop.f32.mrf.mxu0  ;;  %v212_v26 = vpop.f32.mrf.mxu1 }
  0xe9   :  { %480 = vst [vmem:[%s672_s2 + $0x8] sm:$0xff] %v448_v22   ;;  %v443_v27 = vpack.c.bf16 %v180_v25, %v177_v18  ;;  %v320_v28 = vadd.f32 %v180_v25, %v177_v18  ;;  %v342_v29 = vmul.f32 %v180_v25, %v180_v25  ;;  %484 = vst [vmem:[%s672_s2 + $0x28] sm:$0xff] %v468_v23  }
  0xea   :  { %v463_v30 = vpack.c.bf16 %v212_v26, %v209_v19  ;;  %v525_v31 = vpop.f32.mrf.mxu0  ;;  %v533_v32 = vpop.f32.mrf.mxu1  ;;  %v350_v1 = vmul.f32 %v212_v26, %v212_v26 }
  0xeb   :  { %444 = vst [vmem:[%s672_s2] sm:$0xff] %v443_v27   ;;  %v321_v34 = vadd.f32 %v521_v16, %v320_v28  ;;  %v357_v35 = vadd.f32 %v342_v29, %v341_v24  ;;  %v347_v55 = vmul.f32 %v525_v31, %v525_v31  ;;  %v355_v15 = vmul.f32 %v533_v32, %v533_v32 }
  0xec   :  { %483 = vst [vmem:[%s672_s2 + $0x20] sm:$0xff] %v463_v30   ;;  %v193_v36 = vpop.f32.mrf.mxu0  ;;  %v225_v37 = vpop.f32.mrf.mxu1 }
  0xed   :  { %v358_v39 = vadd.f32 %v357_v35, %v343_v33  ;;  %v322_v40 = vadd.f32 %v522_v20, %v321_v34  ;;  %v345_v44 = vmul.f32 %v193_v36, %v193_v36  ;;  %v353_v10 = vmul.f32 %v225_v37, %v225_v37 }
  0xee   :  { %v526_v41 = vpop.f32.mrf.mxu0  ;;  %v534_v42 = vpop.f32.mrf.mxu1 }
  0xef   :  { %v323_v43 = vadd.f32 %v322_v40, %v193_v36  ;;  %v359_v45 = vadd.f32 %v358_v39, %v344_v38  ;;  %v458_v46 = vpack.c.bf16 %v526_v41, %v525_v31  ;;  %v478_v48 = vpack.c.bf16 %v534_v42, %v533_v32 }
  0xf0   :  { %v196_v47 = vpop.f32.mrf.mxu0  ;;  %v228_v49 = vpop.f32.mrf.mxu1  ;;  %v348_v58 = vmul.f32 %v526_v41, %v526_v41  ;;  %v356_v20 = vmul.f32 %v534_v42, %v534_v42 }
  0xf1   :  { %v360_v50 = vadd.f32 %v359_v45, %v345_v44  ;;  %482 = vst [vmem:[%s672_s2 + $0x18] sm:$0xff] %v458_v46   ;;  %v453_v51 = vpack.c.bf16 %v196_v47, %v193_v36  ;;  %v324_v52 = vadd.f32 %v323_v43, %v196_v47  ;;  %v346_v53 = vmul.f32 %v196_v47, %v196_v47 }
  0xf2   :  { %486 = vst [vmem:[%s672_s2 + $0x38] sm:$0xff] %v478_v48   ;;  %v473_v54 = vpack.c.bf16 %v228_v49, %v225_v37  ;;  %v354_v14 = vmul.f32 %v228_v49, %v228_v49 }
  0xf3   :  { %481 = vst [vmem:[%s672_s2 + $0x10] sm:$0xff] %v453_v51   ;;  %v325_v56 = vadd.f32 %v525_v31, %v324_v52  ;;  %v361_v57 = vadd.f32 %v360_v50, %v346_v53 }
  0xf4   :  { %485 = vst [vmem:[%s672_s2 + $0x30] sm:$0xff] %v473_v54  }
  0xf5   :  { %v326_v59 = vadd.f32 %v526_v41, %v325_v56  ;;  %v362_v60 = vadd.f32 %v361_v57, %v347_v55 }
  0xf7   :  { %v363_v62 = vadd.f32 %v362_v60, %v348_v58  ;;  %v327_v63 = vadd.f32 %v326_v59, %v209_v19 }
  0xf9   :  { %v328_v0 = vadd.f32 %v327_v63, %v212_v26  ;;  %v364_v2 = vadd.f32 %v363_v62, %v349_v61 }
  0xfb   :  { %v329_v4 = vadd.f32 %v529_v17, %v328_v0  ;;  %v365_v5 = vadd.f32 %v364_v2, %v350_v1 }
  0xfd   :  { %v366_v7 = vadd.f32 %v365_v5, %v351_v3  ;;  %v330_v8 = vadd.f32 %v530_v21, %v329_v4 }
  0xff   :  { %v331_v9 = vadd.f32 %v330_v8, %v225_v37  ;;  %v367_v11 = vadd.f32 %v366_v7, %v352_v6 }
 0x101   :  { %v368_v12 = vadd.f32 %v367_v11, %v353_v10  ;;  %v332_v13 = vadd.f32 %v331_v9, %v228_v49 }
 0x103   :  { %v333_v16 = vadd.f32 %v533_v32, %v332_v13  ;;  %v369_v18 = vadd.f32 %v368_v12, %v354_v14 }
 0x105   :  { %v334_v19 = vadd.f32 %v534_v42, %v333_v16  ;;  %v370_v22 = vadd.f32 %v369_v18, %v355_v15 }
 0x107   :  { %v335_v23 = vrot.slane %v334_v19, 4  ;;  %v371_v24 = vadd.f32 %v370_v22, %v356_v20 }
 0x109   :  { %v336_v25 = vadd.f32 %v335_v23, %v334_v19  ;;  %v372_v17 = vrot.slane %v371_v24, 4 }
 0x10b   :  { %v337_v26 = vrot.slane %v336_v25, 2  ;;  %v373_v27 = vadd.f32 %v372_v17, %v371_v24 }
 0x10d   :  { %v338_v28 = vadd.f32 %v337_v26, %v336_v25  ;;  %v374_v21 = vrot.slane %v373_v27, 2 }
 0x10f   :  { %v339_v29 = vrot.slane %v338_v28, 1  ;;  %v375_v30 = vadd.f32 %v374_v21, %v373_v27 }
 0x111   :  { %v340_v31 = vadd.f32 %v339_v29, %v338_v28  ;;  %v376_v33 = vrot.slane %v375_v30, 1 }
 0x113   :  { %v377_v34 = vadd.f32 %v376_v33, %v375_v30  ;;  %378 = vst [vmem:[%s673_s3] sm:$0xff] %v340_v31 }
 0x115   :  { %379 = vst [vmem:[%s674_s4] sm:$0xff] %v377_v34 }

// kernel: residual_blk_forward.6
= control target key start
LH: loop header
LB: loop body
LE: loop exit
PB: predicated region body
PF: predicated region fallthrough
CT: control target
= control target key end

     0   :  { %s422_s0 = inlined_call_operand.vmem [shape: bf16[128,128], index: 0, kind: input, shape index: {}]   ;;  %s423_s1 = inlined_call_operand.vmem [shape: f32[1,128], index: 1, kind: input, shape index: {}]   ;;  %s424_s2 = inlined_call_operand.vmem [shape: f32[1,128], index: 2, kind: input, shape index: {}]   ;;  %s425_s3 = inlined_call_operand.vmem [shape: bf16[128,128], index: 3, kind: output, shape index: {}]  }
   0x1   :  { %v227_v0 = vld [vmem:[%s422_s0] sm:$0xff]   ;;  %v298_v4 = vld [vmem:[%s422_s0 + $0x8] sm:$0xff]   ;;  %v299_v5 = vld [vmem:[%s422_s0 + $0x10] sm:$0xff]  }
   0x2   :  { %v338_v1 = vld [vmem:[%s423_s1] ss:$0 sm:$0xff]  ;;  %v228_v2 = vunpack.c.l.bf16 %v227_v0  ;;  %v229_v3 = vunpack.c.h.bf16 %v227_v0  ;;  %v300_v6 = vld [vmem:[%s422_s0 + $0x18] sm:$0xff]   ;;  %v232_v8 = vunpack.c.l.bf16 %v298_v4  ;;  %v233_v9 = vunpack.c.h.bf16 %v298_v4  ;;  %v302_v33 = vld [vmem:[%s422_s0 + $0x28] sm:$0xff]  }
   0x3   :  { %v352_v7 = vld [vmem:[%s424_s2] ss:$0 sm:$0xff]  ;;  %v236_v10 = vunpack.c.l.bf16 %v299_v5  ;;  %v237_v11 = vunpack.c.h.bf16 %v299_v5  ;;  %v240_v14 = vunpack.c.l.bf16 %v300_v6  ;;  %v241_v15 = vunpack.c.h.bf16 %v300_v6  ;;  %v303_v38 = vld [vmem:[%s422_s0 + $0x30] sm:$0xff]   ;;  %v304_v43 = vld [vmem:[%s422_s0 + $0x38] sm:$0xff]  }
   0x4   :  { %v53_v12 = vmul.f32 %v228_v2, %v338_v1  ;;  %v54_v13 = vmul.f32 %v229_v3, %v338_v1  ;;  %v55_v16 = vmul.f32 %v232_v8, %v338_v1  ;;  %v56_v17 = vmul.f32 %v233_v9, %v338_v1  ;;  %v301_v28 = vld [vmem:[%s422_s0 + $0x20] sm:$0xff]  }
   0x5   :  { %v57_v18 = vmul.f32 %v236_v10, %v338_v1  ;;  %v58_v19 = vmul.f32 %v237_v11, %v338_v1  ;;  %v59_v22 = vmul.f32 %v240_v14, %v338_v1  ;;  %v60_v23 = vmul.f32 %v241_v15, %v338_v1 }
   0x6   :  { %v76_v20 = vadd.f32 %v352_v7, %v53_v12  ;;  %v77_v21 = vadd.f32 %v352_v7, %v54_v13  ;;  %v78_v24 = vadd.f32 %v352_v7, %v55_v16  ;;  %v79_v25 = vadd.f32 %v352_v7, %v56_v17 }
   0x7   :  { %v80_v26 = vadd.f32 %v352_v7, %v57_v18  ;;  %v81_v27 = vadd.f32 %v352_v7, %v58_v19  ;;  %v82_v31 = vadd.f32 %v352_v7, %v59_v22  ;;  %v83_v32 = vadd.f32 %v352_v7, %v60_v23 }
   0x8   :  { %v92_v29 = vmax.f32 %v76_v20, 0.0  ;;  %v93_v30 = vmax.f32 %v77_v21, 0.0  ;;  %v94_v34 = vmax.f32 %v78_v24, 0.0  ;;  %v95_v35 = vmax.f32 %v79_v25, 0.0 }
   0x9   :  { %v96_v36 = vmax.f32 %v80_v26, 0.0  ;;  %v97_v37 = vmax.f32 %v81_v27, 0.0  ;;  %v98_v40 = vmax.f32 %v82_v31, 0.0  ;;  %v99_v41 = vmax.f32 %v83_v32, 0.0 }
   0xa   :  { %v261_v39 = vpack.c.bf16 %v93_v30, %v92_v29  ;;  %v244_v42 = vunpack.c.l.bf16 %v301_v28  ;;  %v266_v44 = vpack.c.bf16 %v95_v35, %v94_v34  ;;  %v245_v46 = vunpack.c.h.bf16 %v301_v28 }
   0xb   :  { %v271_v45 = vpack.c.bf16 %v97_v37, %v96_v36  ;;  %v248_v47 = vunpack.c.l.bf16 %v302_v33  ;;  %v276_v48 = vpack.c.bf16 %v99_v41, %v98_v40  ;;  %v249_v50 = vunpack.c.h.bf16 %v302_v33 }
   0xc   :  { %262 = vst [vmem:[%s425_s3] sm:$0xff] %v261_v39   ;;  %v61_v49 = vmul.f32 %v244_v42, %v338_v1  ;;  %v252_v51 = vunpack.c.l.bf16 %v303_v38  ;;  %305 = vst [vmem:[%s425_s3 + $0x8] sm:$0xff] %v266_v44   ;;  %v62_v52 = vmul.f32 %v245_v46, %v338_v1  ;;  %v253_v54 = vunpack.c.h.bf16 %v303_v38 }
   0xd   :  { %306 = vst [vmem:[%s425_s3 + $0x10] sm:$0xff] %v271_v45   ;;  %v63_v53 = vmul.f32 %v248_v47, %v338_v1  ;;  %v256_v55 = vunpack.c.l.bf16 %v304_v43  ;;  %307 = vst [vmem:[%s425_s3 + $0x18] sm:$0xff] %v276_v48   ;;  %v64_v57 = vmul.f32 %v249_v50, %v338_v1  ;;  %v257_v59 = vunpack.c.h.bf16 %v304_v43 }
   0xe   :  { %v84_v56 = vadd.f32 %v352_v7, %v61_v49  ;;  %v65_v58 = vmul.f32 %v252_v51, %v338_v1  ;;  %v85_v60 = vadd.f32 %v352_v7, %v62_v52  ;;  %v66_v62 = vmul.f32 %v253_v54, %v338_v1 }
   0xf   :  { %v86_v61 = vadd.f32 %v352_v7, %v63_v53  ;;  %v67_v63 = vmul.f32 %v256_v55, %v338_v1  ;;  %v87_v2 = vadd.f32 %v352_v7, %v64_v57  ;;  %v68_v4 = vmul.f32 %v257_v59, %v338_v1 }
  0x10   :  { %v100_v0 = vmax.f32 %v84_v56, 0.0  ;;  %v88_v3 = vadd.f32 %v352_v7, %v65_v58  ;;  %v101_v5 = vmax.f32 %v85_v60, 0.0  ;;  %v89_v8 = vadd.f32 %v352_v7, %v66_v62 }
  0x11   :  { %v102_v6 = vmax.f32 %v86_v61, 0.0  ;;  %v90_v9 = vadd.f32 %v352_v7, %v67_v63  ;;  %v103_v10 = vmax.f32 %v87_v2, 0.0  ;;  %v91_v12 = vadd.f32 %v352_v7, %v68_v4 }
  0x12   :  { %v104_v11 = vmax.f32 %v88_v3, 0.0  ;;  %v281_v13 = vpack.c.bf16 %v101_v5, %v100_v0  ;;  %v105_v14 = vmax.f32 %v89_v8, 0.0 }
  0x13   :  { %v106_v15 = vmax.f32 %v90_v9, 0.0  ;;  %v286_v16 = vpack.c.bf16 %v103_v10, %v102_v6  ;;  %v107_v17 = vmax.f32 %v91_v12, 0.0 }
  0x14   :  { %308 = vst [vmem:[%s425_s3 + $0x20] sm:$0xff] %v281_v13   ;;  %v291_v1 = vpack.c.bf16 %v105_v14, %v104_v11 }
  0x15   :  { %309 = vst [vmem:[%s425_s3 + $0x28] sm:$0xff] %v286_v16   ;;  %v296_v18 = vpack.c.bf16 %v107_v17, %v106_v15 }
  0x16   :  { %310 = vst [vmem:[%s425_s3 + $0x30] sm:$0xff] %v291_v1  }
  0x17   :  { %311 = vst [vmem:[%s425_s3 + $0x38] sm:$0xff] %v296_v18  }

// kernel: residual_blk_forward.9
= control target key start
LH: loop header
LB: loop body
LE: loop exit
PB: predicated region body
PF: predicated region fallthrough
CT: control target
= control target key end

     0   :  { %s528_s0 = inlined_call_operand.vmem [shape: bf16[128,128], index: 0, kind: input, shape index: {}]   ;;  %s529_s1 = inlined_call_operand.vmem [shape: bf16[128,128], index: 1, kind: input, shape index: {}]   ;;  %s530_s2 = inlined_call_operand.vmem [shape: f32[1,128], index: 2, kind: input, shape index: {}]   ;;  %s531_s3 = inlined_call_operand.vmem [shape: f32[1,128], index: 3, kind: input, shape index: {}]   ;;  %s532_s4 = inlined_call_operand.vmem [shape: f32[1,128], index: 4, kind: input, shape index: {}]   ;;  %s533_s5 = inlined_call_operand.vmem [shape: f32[1,128], index: 5, kind: input, shape index: {}]   ;;  %s534_s6 = inlined_call_operand.vmem [shape: f32[128,128], index: 6, kind: output, shape index: {}]  }
   0x1   :  { %v236_v0 = vld [vmem:[%s528_s0] sm:$0xff]   ;;  %v299_v9 = vld [vmem:[%s528_s0 + $0x8] sm:$0xff]   ;;  %v300_v15 = vld [vmem:[%s528_s0 + $0x10] sm:$0xff]  }
   0x2   :  { %v354_v1 = vld [vmem:[%s530_s2] ss:$0 sm:$0xff]  ;;  %v237_v2 = vunpack.c.l.bf16 %v236_v0  ;;  %v238_v5 = vunpack.c.h.bf16 %v236_v0  ;;  %v306_v10 = vld [vmem:[%s529_s1 + $0x8] sm:$0xff]   ;;  %v241_v13 = vunpack.c.l.bf16 %v299_v9  ;;  %v307_v16 = vld [vmem:[%s529_s1 + $0x10] sm:$0xff]   ;;  %v242_v19 = vunpack.c.h.bf16 %v299_v9 }
   0x3   :  { %v268_v3 = vld [vmem:[%s529_s1] sm:$0xff]   ;;  %v273_v14 = vunpack.c.l.bf16 %v306_v10  ;;  %v274_v20 = vunpack.c.h.bf16 %v306_v10  ;;  %v245_v28 = vunpack.c.l.bf16 %v300_v15  ;;  %v277_v29 = vunpack.c.l.bf16 %v307_v16  ;;  %v301_v34 = vld [vmem:[%s528_s0 + $0x18] sm:$0xff]   ;;  %v303_v9 = vld [vmem:[%s528_s0 + $0x28] sm:$0xff]  }
   0x4   :  { %v362_v4 = vld [vmem:[%s532_s4] ss:$0 sm:$0xff]  ;;  %v269_v7 = vunpack.c.l.bf16 %v268_v3  ;;  %v270_v8 = vunpack.c.h.bf16 %v268_v3  ;;  %v62_v11 = vmul.f32 %v237_v2, %v354_v1  ;;  %v63_v12 = vmul.f32 %v238_v5, %v354_v1  ;;  %v308_v43 = vld [vmem:[%s529_s1 + $0x18] sm:$0xff]  }
   0x5   :  { %v367_v6 = vld [vmem:[%s531_s3] ss:$0 sm:$0xff]  ;;  %v64_v23 = vmul.f32 %v241_v13, %v354_v1  ;;  %v142_v24 = vmul.f32 %v273_v14, %v362_v4  ;;  %v65_v26 = vmul.f32 %v242_v19, %v354_v1  ;;  %v143_v27 = vmul.f32 %v274_v20, %v362_v4  ;;  %v310_v14 = vld [vmem:[%s529_s1 + $0x28] sm:$0xff]  }
   0x6   :  { %v140_v17 = vmul.f32 %v269_v7, %v362_v4  ;;  %v141_v18 = vmul.f32 %v270_v8, %v362_v4  ;;  %v85_v21 = vadd.f32 %v367_v6, %v62_v11  ;;  %v86_v22 = vadd.f32 %v367_v6, %v63_v12  ;;  %v392_v25 = vld [vmem:[%s533_s5] ss:$0 sm:$0xff] }
   0x7   :  { %v87_v32 = vadd.f32 %v367_v6, %v64_v23  ;;  %v246_v33 = vunpack.c.h.bf16 %v300_v15  ;;  %v88_v35 = vadd.f32 %v367_v6, %v65_v26  ;;  %v66_v36 = vmul.f32 %v245_v28, %v354_v1  ;;  %v302_v56 = vld [vmem:[%s528_s0 + $0x20] sm:$0xff]   ;;  %v304_v28 = vld [vmem:[%s528_s0 + $0x30] sm:$0xff]  }
   0x8   :  { %v156_v30 = vadd.f32 %v140_v17, %v85_v21  ;;  %v157_v31 = vadd.f32 %v141_v18, %v86_v22  ;;  %v144_v37 = vmul.f32 %v277_v29, %v362_v4  ;;  %v278_v38 = vunpack.c.h.bf16 %v307_v16  ;;  %v309_v61 = vld [vmem:[%s529_s1 + $0x20] sm:$0xff]  }
   0x9   :  { %v158_v41 = vadd.f32 %v142_v24, %v87_v32  ;;  %v67_v42 = vmul.f32 %v246_v33, %v354_v1  ;;  %v159_v44 = vadd.f32 %v143_v27, %v88_v35  ;;  %v89_v45 = vadd.f32 %v367_v6, %v66_v36  ;;  %v311_v33 = vld [vmem:[%s529_s1 + $0x30] sm:$0xff]  }
   0xa   :  { %v179_v39 = vadd.f32 %v392_v25, %v156_v30  ;;  %v180_v40 = vadd.f32 %v392_v25, %v157_v31  ;;  %v145_v46 = vmul.f32 %v278_v38, %v362_v4  ;;  %v249_v47 = vunpack.c.l.bf16 %v301_v34 }
   0xb   :  { %v181_v50 = vadd.f32 %v392_v25, %v158_v41  ;;  %v90_v51 = vadd.f32 %v367_v6, %v67_v42  ;;  %v182_v52 = vadd.f32 %v392_v25, %v159_v44  ;;  %v160_v53 = vadd.f32 %v144_v37, %v89_v45 }
   0xc   :  { %v195_v48 = vmax.f32 %v179_v39, 0.0  ;;  %v196_v49 = vmax.f32 %v180_v40, 0.0  ;;  %v68_v54 = vmul.f32 %v249_v47, %v354_v1  ;;  %v281_v55 = vunpack.c.l.bf16 %v308_v43 }
   0xd   :  { %v197_v57 = vmax.f32 %v181_v50, 0.0  ;;  %v161_v58 = vadd.f32 %v145_v46, %v90_v51  ;;  %v250_v59 = vunpack.c.h.bf16 %v301_v34  ;;  %v282_v60 = vunpack.c.h.bf16 %v308_v43  ;;  %v305_v50 = vld [vmem:[%s528_s0 + $0x38] sm:$0xff]  }
   0xe   :  { %211 = vst [vmem:[%s534_s6] sm:$0xff] %v195_v48  ;;  %212 = vst [vmem:[%s534_s6 + $0x8] sm:$0xff] %v196_v49  ;;  %v198_v62 = vmax.f32 %v182_v52, 0.0  ;;  %v183_v63 = vadd.f32 %v392_v25, %v160_v53  ;;  %v91_v0 = vadd.f32 %v367_v6, %v68_v54  ;;  %v146_v2 = vmul.f32 %v281_v55, %v362_v4  ;;  %v312_v51 = vld [vmem:[%s529_s1 + $0x38] sm:$0xff]  }
   0xf   :  { %213 = vst [vmem:[%s534_s6 + $0x10] sm:$0xff] %v197_v57  ;;  %v184_v3 = vadd.f32 %v392_v25, %v161_v58  ;;  %v69_v5 = vmul.f32 %v250_v59, %v354_v1  ;;  %v147_v7 = vmul.f32 %v282_v60, %v362_v4  ;;  %v253_v8 = vunpack.c.l.bf16 %v302_v56 }
  0x10   :  { %214 = vst [vmem:[%s534_s6 + $0x18] sm:$0xff] %v198_v62  ;;  %v199_v10 = vmax.f32 %v183_v63, 0.0  ;;  %v162_v11 = vadd.f32 %v146_v2, %v91_v0  ;;  %v285_v12 = vunpack.c.l.bf16 %v309_v61  ;;  %v254_v13 = vunpack.c.h.bf16 %v302_v56 }
  0x11   :  { %v200_v15 = vmax.f32 %v184_v3, 0.0  ;;  %v92_v16 = vadd.f32 %v367_v6, %v69_v5  ;;  %v70_v17 = vmul.f32 %v253_v8, %v354_v1  ;;  %v286_v18 = vunpack.c.h.bf16 %v309_v61 }
  0x12   :  { %215 = vst [vmem:[%s534_s6 + $0x20] sm:$0xff] %v199_v10  ;;  %v185_v19 = vadd.f32 %v392_v25, %v162_v11  ;;  %v148_v20 = vmul.f32 %v285_v12, %v362_v4  ;;  %v71_v21 = vmul.f32 %v254_v13, %v354_v1  ;;  %v257_v22 = vunpack.c.l.bf16 %v303_v9 }
  0x13   :  { %216 = vst [vmem:[%s534_s6 + $0x28] sm:$0xff] %v200_v15  ;;  %v163_v23 = vadd.f32 %v147_v7, %v92_v16  ;;  %v93_v24 = vadd.f32 %v367_v6, %v70_v17  ;;  %v149_v26 = vmul.f32 %v286_v18, %v362_v4  ;;  %v289_v27 = vunpack.c.l.bf16 %v310_v14 }
  0x14   :  { %v201_v29 = vmax.f32 %v185_v19, 0.0  ;;  %v94_v30 = vadd.f32 %v367_v6, %v71_v21  ;;  %v72_v31 = vmul.f32 %v257_v22, %v354_v1  ;;  %v258_v32 = vunpack.c.h.bf16 %v303_v9 }
  0x15   :  { %v186_v34 = vadd.f32 %v392_v25, %v163_v23  ;;  %v164_v35 = vadd.f32 %v148_v20, %v93_v24  ;;  %v150_v36 = vmul.f32 %v289_v27, %v362_v4  ;;  %v290_v37 = vunpack.c.h.bf16 %v310_v14 }
  0x16   :  { %217 = vst [vmem:[%s534_s6 + $0x30] sm:$0xff] %v201_v29  ;;  %v165_v38 = vadd.f32 %v149_v26, %v94_v30  ;;  %v95_v39 = vadd.f32 %v367_v6, %v72_v31  ;;  %v73_v40 = vmul.f32 %v258_v32, %v354_v1  ;;  %v261_v41 = vunpack.c.l.bf16 %v304_v28 }
  0x17   :  { %v202_v42 = vmax.f32 %v186_v34, 0.0  ;;  %v187_v43 = vadd.f32 %v392_v25, %v164_v35  ;;  %v151_v44 = vmul.f32 %v290_v37, %v362_v4  ;;  %v293_v45 = vunpack.c.l.bf16 %v311_v33 }
  0x18   :  { %v188_v46 = vadd.f32 %v392_v25, %v165_v38  ;;  %v166_v47 = vadd.f32 %v150_v36, %v95_v39  ;;  %v96_v48 = vadd.f32 %v367_v6, %v73_v40  ;;  %v74_v49 = vmul.f32 %v261_v41, %v354_v1 }
  0x19   :  { %218 = vst [vmem:[%s534_s6 + $0x38] sm:$0xff] %v202_v42  ;;  %v203_v52 = vmax.f32 %v187_v43, 0.0  ;;  %v152_v53 = vmul.f32 %v293_v45, %v362_v4  ;;  %v262_v54 = vunpack.c.h.bf16 %v304_v28  ;;  %v294_v55 = vunpack.c.h.bf16 %v311_v33 }
  0x1a   :  { %v204_v56 = vmax.f32 %v188_v46, 0.0  ;;  %v189_v57 = vadd.f32 %v392_v25, %v166_v47  ;;  %v167_v58 = vadd.f32 %v151_v44, %v96_v48  ;;  %v97_v59 = vadd.f32 %v367_v6, %v74_v49 }
  0x1b   :  { %219 = vst [vmem:[%s534_s6 + $0x40] sm:$0xff] %v203_v52  ;;  %v75_v60 = vmul.f32 %v262_v54, %v354_v1  ;;  %v153_v61 = vmul.f32 %v294_v55, %v362_v4  ;;  %v265_v62 = vunpack.c.l.bf16 %v305_v50  ;;  %v297_v63 = vunpack.c.l.bf16 %v312_v51 }
  0x1c   :  { %220 = vst [vmem:[%s534_s6 + $0x48] sm:$0xff] %v204_v56  ;;  %v205_v0 = vmax.f32 %v189_v57, 0.0  ;;  %v190_v2 = vadd.f32 %v392_v25, %v167_v58  ;;  %v168_v3 = vadd.f32 %v152_v53, %v97_v59  ;;  %v266_v5 = vunpack.c.h.bf16 %v305_v50 }
  0x1d   :  { %v98_v7 = vadd.f32 %v367_v6, %v75_v60  ;;  %v76_v8 = vmul.f32 %v265_v62, %v354_v1  ;;  %v154_v9 = vmul.f32 %v297_v63, %v362_v4  ;;  %v298_v10 = vunpack.c.h.bf16 %v312_v51 }
  0x1e   :  { %221 = vst [vmem:[%s534_s6 + $0x50] sm:$0xff] %v205_v0  ;;  %v206_v11 = vmax.f32 %v190_v2, 0.0  ;;  %v191_v12 = vadd.f32 %v392_v25, %v168_v3  ;;  %v77_v13 = vmul.f32 %v266_v5, %v354_v1 }
  0x1f   :  { %v169_v14 = vadd.f32 %v153_v61, %v98_v7  ;;  %v99_v15 = vadd.f32 %v367_v6, %v76_v8  ;;  %v155_v16 = vmul.f32 %v298_v10, %v362_v4 }
  0x20   :  { %222 = vst [vmem:[%s534_s6 + $0x58] sm:$0xff] %v206_v11  ;;  %v207_v17 = vmax.f32 %v191_v12, 0.0  ;;  %v100_v18 = vadd.f32 %v367_v6, %v77_v13 }
  0x21   :  { %v192_v19 = vadd.f32 %v392_v25, %v169_v14  ;;  %v170_v20 = vadd.f32 %v154_v9, %v99_v15 }
  0x22   :  { %223 = vst [vmem:[%s534_s6 + $0x60] sm:$0xff] %v207_v17  ;;  %v171_v1 = vadd.f32 %v155_v16, %v100_v18 }
  0x23   :  { %v208_v21 = vmax.f32 %v192_v19, 0.0  ;;  %v193_v22 = vadd.f32 %v392_v25, %v170_v20 }
  0x24   :  { %v194_v4 = vadd.f32 %v392_v25, %v171_v1 }
  0x25   :  { %224 = vst [vmem:[%s534_s6 + $0x68] sm:$0xff] %v208_v21  ;;  %v209_v23 = vmax.f32 %v193_v22, 0.0 }
  0x26   :  { %v210_v24 = vmax.f32 %v194_v4, 0.0 }
  0x27   :  { %225 = vst [vmem:[%s534_s6 + $0x70] sm:$0xff] %v209_v23 }
  0x28   :  { %226 = vst [vmem:[%s534_s6 + $0x78] sm:$0xff] %v210_v24 }

</bundles_post_ra>
